<compile_context>
chip_gen: v7x
topology: tpu7x:2x2x1
jax: 0.10.0
libtpu: 0.0.40
codegen_flags: <defaults>
</compile_context>

<pallas_src>
import functools

import jax
import jax.numpy as jnp
from jax.experimental import pallas as pl
from jax.experimental.pallas import tpu as pltpu

OUT_W = 128  # lane width of the single packed output slab
# packed output lanes: 0 = value, 1 = action_log_prob, 2 = action (as f32)


def _round_up(a, m):
    return ((a + m - 1) // m) * m


def _pick_batch_tile(batch):
    """Batch tile selection.

    * B <= 256 rows: one grid step (weights are the dominant HBM traffic at
      small B; splitting would DMA them twice -- once per TensorCore).
    * larger B: split into >=2 'parallel' grid steps so both v7x TensorCores
      engage, capped at 1024 rows/tile (comfortable in v7x's 64 MiB VMEM,
      and big enough to amortize the ~0.35us per-step overhead on v5e/v6e).
    """
    padded = _round_up(batch, 8)
    if padded <= 256:
        return padded
    return min(1024, _round_up((padded + 1) // 2, 8))


def pack_policy_params(p, compute_dtype=jnp.float32):
    """Fuse the 6 nn.Linear layers into 3 lane-dense matmuls (done once,
    outside the kernel).  Raw params use [in, out] weights and [1, out]
    biases.  Use compute_dtype=jnp.bfloat16 for deployment (halves the
    dominant weight DMA); biases stay f32 (accumulation is f32 regardless)."""
    n_in, hid = p["wc1"].shape
    n_act = p["wd"].shape[1]
    hp = 2 * hid                                   # 128 for the default hid=64
    head_w = max(128, _round_up(n_act + 1, 128))   # logits + value, lane-padded

    # layer 1: x @ [wc1 | wa1]
    w1 = jnp.concatenate([p["wc1"], p["wa1"]], axis=1)
    b1 = jnp.concatenate([p["bc1"], p["ba1"]], axis=1)

    # layer 2: block-diagonal so critic/actor halves stay independent
    w2 = jnp.zeros((hp, hp), jnp.float32)
    w2 = w2.at[:hid, :hid].set(p["wc2"]).at[hid:, hid:].set(p["wa2"])
    b2 = jnp.concatenate([p["bc2"], p["ba2"]], axis=1)

    # fused head: lanes [0, n_act) = categorical logits, lane head_w-1 = value
    wh = jnp.zeros((hp, head_w), jnp.float32)
    wh = wh.at[hid:, :n_act].set(p["wd"])                 # actor hidden  -> logits
    wh = wh.at[:hid, head_w - 1:head_w].set(p["wv"])      # critic hidden -> value
    bh = jnp.zeros((1, head_w), jnp.float32)
    bh = bh.at[:, :n_act].set(p["bd"]).at[:, head_w - 1:].set(p["bv"])

    return {
        "w1": w1.astype(compute_dtype), "b1": b1,
        "w2": w2.astype(compute_dtype), "b2": b2,
        "wh": wh.astype(compute_dtype), "bh": bh,
        "n_act": n_act,
    }


def _policy_act_kernel(x_ref, w1_ref, b1_ref, w2_ref, b2_ref, wh_ref, bh_ref,
                       out_ref, *, n_act):
    f32 = jnp.float32
    cdt = w1_ref.dtype            # matmul input dtype (f32, or bf16 for deploy)

    x = x_ref[...].astype(cdt)
    # fused critic|actor layers: one full-lane-width MXU op each, f32 accumulate
    h1 = jnp.tanh(jnp.dot(x, w1_ref[...], preferred_element_type=f32) + b1_ref[...])
    h2 = jnp.tanh(jnp.dot(h1.astype(cdt), w2_ref[...],
                          preferred_element_type=f32) + b2_ref[...])
    # fused heads: lanes [0, n_act) = logits, lane head_w-1 = value
    head = jnp.dot(h2.astype(cdt), wh_ref[...],
                   preferred_element_type=f32) + bh_ref[...]

    bt, head_w = head.shape
    col = jax.lax.broadcasted_iota(jnp.int32, (bt, head_w), 1)
    # mask padding lanes AND the value lane out of the categorical logits
    logits = jnp.where(col < n_act, head, jnp.float32(-1e30))

    m = jnp.max(logits, axis=-1, keepdims=True)
    # deterministic action = dist.mode() = first argmax index
    action = jnp.min(jnp.where(logits == m, col, head_w), axis=-1, keepdims=True)
    lse = jnp.log(jnp.sum(jnp.exp(logits - m), axis=-1, keepdims=True)) + m
    # log_probs at the selected action, without materializing log_softmax
    logp = jnp.sum(jnp.where(col == action, logits, 0.0),
                   axis=-1, keepdims=True) - lse
    # value = critic_linear(hidden_critic), stored in the last head lane
    value = head[:, head_w - 1:head_w]

    # single lane-dense packed output (full-width unmasked store):
    #   lane 0 = value, lane 1 = logp, lane 2 = action (exact as f32)
    colo = col if head_w == out_ref.shape[-1] else jax.lax.broadcasted_iota(
        jnp.int32, (bt, out_ref.shape[-1]), 1)
    out_ref[...] = jnp.where(colo == 0, value,
                             jnp.where(colo == 1, logp,
                                       jnp.where(colo == 2, action.astype(f32),
                                                 0.0)))


def policy_act(x, packed):
    """Pallas version of Policy.act(inputs, rnn_hxs, masks, deterministic=True)
    for the non-recurrent MLPBase + Discrete configuration.
    Returns (value, action, action_log_probs)."""
    B, n_in = x.shape
    n_act = packed["n_act"]
    w1, b1 = packed["w1"], packed["b1"]
    w2, b2 = packed["w2"], packed["b2"]
    wh, bh = packed["wh"], packed["bh"]

    bt = _pick_batch_tile(B)
    grid = (pl.cdiv(B, bt),)

    def full_spec(a):
        return pl.BlockSpec(a.shape, lambda i: (0, 0))

    in_specs = [pl.BlockSpec((bt, n_in), lambda i: (i, 0))] + [
        full_spec(a) for a in (w1, b1, w2, b2, wh, bh)]
    out_specs = pl.BlockSpec((bt, OUT_W), lambda i: (i, 0))
    out_shape = jax.ShapeDtypeStruct((B, OUT_W), jnp.float32)

    hp = w1.shape[1]
    head_w = wh.shape[1]
    weight_bytes = sum(int(a.size) * a.dtype.itemsize
                       for a in (w1, b1, w2, b2, wh, bh))
    cost = pl.CostEstimate(
        flops=2 * B * (n_in * hp + hp * hp + hp * head_w),
        transcendentals=B * (2 * hp + head_w),          # tanh x2 + exp
        bytes_accessed=4 * B * n_in + weight_bytes + B * OUT_W * 4,
    )

    fn = pl.pallas_call(
        functools.partial(_policy_act_kernel, n_act=n_act),
        grid=grid,
        in_specs=in_specs,
        out_specs=out_specs,
        out_shape=out_shape,
        compiler_params=pltpu.CompilerParams(
            dimension_semantics=("parallel",)),
        cost_estimate=cost,
    )
    out = fn(x, w1, b1, w2, b2, wh, bh)
    value = out[:, 0:1]
    logp = out[:, 1:2]
    action = out[:, 2:3].astype(jnp.int32)
    return value, action, logp


def init_normc(key, out_dim, in_dim):
    """Mimics init_normc_ from the repo (row-normalized normal), stored as [in, out]."""
    w = jax.random.normal(key, (out_dim, in_dim), jnp.float32)
    w = w / jnp.sqrt(jnp.sum(w * w, axis=1, keepdims=True))
    return jnp.transpose(w)  # [in, out]


def ref_act(x, p):
    """Pure-JAX reference of the same forward path (correctness guard)."""
    hc = jnp.tanh(x @ p["wc1"] + p["bc1"])
    hc = jnp.tanh(hc @ p["wc2"] + p["bc2"])
    ha = jnp.tanh(x @ p["wa1"] + p["ba1"])
    ha = jnp.tanh(ha @ p["wa2"] + p["ba2"])
    value = hc @ p["wv"] + p["bv"]
    logits = ha @ p["wd"] + p["bd"]
    action = jnp.argmax(logits, axis=-1, keepdims=True).astype(jnp.int32)
    log_sm = jax.nn.log_softmax(logits, axis=-1)
    logp = jnp.take_along_axis(log_sm, action, axis=-1)
    return value, action, logp, logits


if __name__ == "__main__":
    key = jax.random.PRNGKey(0)
    B, n_in, hid, n_act = 8, 16, 64, 4  # hidden_size=64 matches MLPBase default

    k = jax.random.split(key, 8)
    params = {
        "wc1": init_normc(k[0], hid, n_in), "bc1": jnp.zeros((1, hid), jnp.float32),
        "wc2": init_normc(k[1], hid, hid),  "bc2": jnp.zeros((1, hid), jnp.float32),
        "wa1": init_normc(k[2], hid, n_in), "ba1": jnp.zeros((1, hid), jnp.float32),
        "wa2": init_normc(k[3], hid, hid),  "ba2": jnp.zeros((1, hid), jnp.float32),
        "wv":  init_normc(k[4], 1,   hid),  "bv":  jnp.zeros((1, 1),   jnp.float32),
        "wd":  init_normc(k[5], n_act, hid), "bd": jnp.zeros((1, n_act), jnp.float32),
    }

    x = jax.random.uniform(k[6], (B, n_in), jnp.float32)
    rnn_hxs = jnp.zeros((B, 1), jnp.float32)  # non-recurrent: passthrough
    masks = jnp.ones((B, 1), jnp.float32)     # unused when not recurrent

    # ---- f32 path: tight correctness guard -------------------------------
    packed = pack_policy_params(params, compute_dtype=jnp.float32)
    value, action, logp = policy_act(x, packed)
    jax.block_until_ready((value, action, logp, rnn_hxs))

    v_ref, a_ref, lp_ref, logits_ref = ref_act(x, params)
    assert jnp.allclose(value, v_ref, atol=1e-4, rtol=1e-4)
    assert jnp.array_equal(action, a_ref)
    assert jnp.allclose(logp, lp_ref, atol=1e-4, rtol=1e-4)

    # ---- grid > 1 with a partial last tile (still f32, tight guard) ------
    B2 = 260
    x2 = jax.random.uniform(k[7], (B2, n_in), jnp.float32)
    v2, a2, lp2 = policy_act(x2, packed)
    jax.block_until_ready((v2, a2, lp2))
    v2r, a2r, lp2r, _ = ref_act(x2, params)
    assert jnp.allclose(v2, v2r, atol=1e-4, rtol=1e-4)
    assert jnp.array_equal(a2, a2r)
    assert jnp.allclose(lp2, lp2r, atol=1e-4, rtol=1e-4)

    # ---- bf16 deployment path (halves the dominant weight DMA) -----------
    # Argmax may legitimately flip on near-tied logits under bf16 weights, so
    # check: value close, returned action is a near-argmax of the f32 logits,
    # and logp matches log_softmax evaluated at the returned action.
    packed_bf16 = pack_policy_params(params, compute_dtype=jnp.bfloat16)
    v_bf, a_bf, lp_bf = policy_act(x, packed_bf16)
    jax.block_until_ready((v_bf, a_bf, lp_bf))
    assert jnp.allclose(v_bf, v_ref, atol=5e-2, rtol=5e-2)
    assert jnp.all((a_bf >= 0) & (a_bf < n_act))
    log_sm_ref = jax.nn.log_softmax(logits_ref, axis=-1)
    lp_at_abf = jnp.take_along_axis(log_sm_ref, a_bf, axis=-1)
    assert jnp.allclose(lp_bf, lp_at_abf, atol=5e-2, rtol=5e-2)
    assert jnp.all(jnp.take_along_axis(logits_ref, a_bf, axis=-1)
                   >= jnp.max(logits_ref, axis=-1, keepdims=True) - 5e-2)

    # TODO(synk): recurrent GRU path (_forward_gru), stochastic dist.sample(),
    # the CNN/CNNMeta bases, and cross-call weight-prefetch amortization for
    # per-step RL inference are not implemented here.
    print("KERNEL_OK")
</pallas_src>

<mosaic_0001>
module attributes {stable_mosaic.version = 11 : i64} {
  func.func @_policy_act_kernel(%arg0: i32, %arg1: memref<8x16xf32, #tpu.memory_space<vmem>>, %arg2: memref<16x128xf32, #tpu.memory_space<vmem>>, %arg3: memref<1x128xf32, #tpu.memory_space<vmem>>, %arg4: memref<128x128xf32, #tpu.memory_space<vmem>>, %arg5: memref<1x128xf32, #tpu.memory_space<vmem>>, %arg6: memref<128x128xf32, #tpu.memory_space<vmem>>, %arg7: memref<1x128xf32, #tpu.memory_space<vmem>>, %arg8: memref<8x128xf32, #tpu.memory_space<vmem>>) attributes {dimension_semantics = [#tpu.dimension_semantics<parallel>], iteration_bounds = array<i64: 1>, scalar_prefetch = 0 : i64, scratch_operands = 0 : i64, tpu.core_type = #tpu.core_type<tc>, window_params = [{transform_indices = @transform_0, window_bounds = array<i64: 8, 16>}, {pipeline_mode = #tpu.pipeline_mode<synchronous>, transform_indices = @transform_1, window_bounds = array<i64: 16, 128>}, {pipeline_mode = #tpu.pipeline_mode<synchronous>, transform_indices = @transform_2, window_bounds = array<i64: 1, 128>}, {pipeline_mode = #tpu.pipeline_mode<synchronous>, transform_indices = @transform_3, window_bounds = array<i64: 128, 128>}, {pipeline_mode = #tpu.pipeline_mode<synchronous>, transform_indices = @transform_4, window_bounds = array<i64: 1, 128>}, {pipeline_mode = #tpu.pipeline_mode<synchronous>, transform_indices = @transform_5, window_bounds = array<i64: 128, 128>}, {pipeline_mode = #tpu.pipeline_mode<synchronous>, transform_indices = @transform_6, window_bounds = array<i64: 1, 128>}, {transform_indices = @transform_7, window_bounds = array<i64: 8, 128>}]} {
    %c0 = arith.constant 0 : index
    %c0_0 = arith.constant 0 : index
    %0 = vector.load %arg1[%c0, %c0_0] : memref<8x16xf32, #tpu.memory_space<vmem>>, vector<8x16xf32>
    %c0_1 = arith.constant 0 : index
    %c0_2 = arith.constant 0 : index
    %1 = vector.load %arg2[%c0_1, %c0_2] : memref<16x128xf32, #tpu.memory_space<vmem>>, vector<16x128xf32>
    %cst = arith.constant dense<0.000000e+00> : vector<8x128xf32>
    %2 = tpu.matmul %0, %1, %cst {dimension_numbers = #tpu.dot_dimension_numbers<[1], [0], [0], [1], [0, 0, 1, 1], [], []>} : vector<8x16xf32>, vector<16x128xf32>, vector<8x128xf32> -> vector<8x128xf32>
    %c0_3 = arith.constant 0 : index
    %c0_4 = arith.constant 0 : index
    %3 = vector.load %arg3[%c0_3, %c0_4] : memref<1x128xf32, #tpu.memory_space<vmem>>, vector<1x128xf32>
    %4 = vector.broadcast %3 : vector<1x128xf32> to vector<8x128xf32>
    %5 = arith.addf %2, %4 : vector<8x128xf32>
    %6 = math.tanh %5 : vector<8x128xf32>
    %c0_5 = arith.constant 0 : index
    %c0_6 = arith.constant 0 : index
    %7 = vector.load %arg4[%c0_5, %c0_6] : memref<128x128xf32, #tpu.memory_space<vmem>>, vector<128x128xf32>
    %cst_7 = arith.constant dense<0.000000e+00> : vector<8x128xf32>
    %8 = tpu.matmul %6, %7, %cst_7 {dimension_numbers = #tpu.dot_dimension_numbers<[1], [0], [0], [1], [0, 0, 1, 1], [], []>} : vector<8x128xf32>, vector<128x128xf32>, vector<8x128xf32> -> vector<8x128xf32>
    %c0_8 = arith.constant 0 : index
    %c0_9 = arith.constant 0 : index
    %9 = vector.load %arg5[%c0_8, %c0_9] : memref<1x128xf32, #tpu.memory_space<vmem>>, vector<1x128xf32>
    %10 = vector.broadcast %9 : vector<1x128xf32> to vector<8x128xf32>
    %11 = arith.addf %8, %10 : vector<8x128xf32>
    %12 = math.tanh %11 : vector<8x128xf32>
    %c0_10 = arith.constant 0 : index
    %c0_11 = arith.constant 0 : index
    %13 = vector.load %arg6[%c0_10, %c0_11] : memref<128x128xf32, #tpu.memory_space<vmem>>, vector<128x128xf32>
    %cst_12 = arith.constant dense<0.000000e+00> : vector<8x128xf32>
    %14 = tpu.matmul %12, %13, %cst_12 {dimension_numbers = #tpu.dot_dimension_numbers<[1], [0], [0], [1], [0, 0, 1, 1], [], []>} : vector<8x128xf32>, vector<128x128xf32>, vector<8x128xf32> -> vector<8x128xf32>
    %c0_13 = arith.constant 0 : index
    %c0_14 = arith.constant 0 : index
    %15 = vector.load %arg7[%c0_13, %c0_14] : memref<1x128xf32, #tpu.memory_space<vmem>>, vector<1x128xf32>
    %16 = vector.broadcast %15 : vector<1x128xf32> to vector<8x128xf32>
    %17 = arith.addf %14, %16 : vector<8x128xf32>
    %18 = tpu.iota {dimensions = array<i32: 1>} : vector<8x128xi32>
    %c4_i32 = arith.constant 4 : i32
    %19 = vector.broadcast %c4_i32 : i32 to vector<8x128xi32>
    %20 = arith.cmpi slt, %18, %19 : vector<8x128xi32>
    %cst_15 = arith.constant -1.000000e+30 : f32
    %21 = vector.broadcast %cst_15 : f32 to vector<8x128xf32>
    %22 = arith.select %20, %17, %21 : vector<8x128xi1>, vector<8x128xf32>
    %cst_16 = arith.constant dense<0xFF800000> : vector<8xf32>
    %23 = vector.multi_reduction <maximumf>, %22, %cst_16 [1] : vector<8x128xf32> to vector<8xf32>
    %24 = vector.shape_cast %23 : vector<8xf32> to vector<8x1xf32>
    %25 = vector.broadcast %24 : vector<8x1xf32> to vector<8x128xf32>
    %26 = arith.cmpf oeq, %22, %25 : vector<8x128xf32>
    %c128_i32 = arith.constant 128 : i32
    %27 = vector.broadcast %c128_i32 : i32 to vector<8x128xi32>
    %28 = arith.select %26, %18, %27 : vector<8x128xi1>, vector<8x128xi32>
    %cst_17 = arith.constant dense<2147483647> : vector<8xi32>
    %29 = vector.multi_reduction <minsi>, %28, %cst_17 [1] : vector<8x128xi32> to vector<8xi32>
    %30 = vector.shape_cast %29 : vector<8xi32> to vector<8x1xi32>
    %31 = vector.broadcast %24 : vector<8x1xf32> to vector<8x128xf32>
    %32 = arith.subf %22, %31 : vector<8x128xf32>
    %33 = math.exp %32 : vector<8x128xf32>
    %cst_18 = arith.constant dense<0.000000e+00> : vector<8xf32>
    %34 = vector.multi_reduction <add>, %33, %cst_18 [1] : vector<8x128xf32> to vector<8xf32>
    %35 = vector.shape_cast %34 : vector<8xf32> to vector<8x1xf32>
    %36 = math.log %35 : vector<8x1xf32>
    %37 = arith.addf %36, %24 : vector<8x1xf32>
    %38 = vector.broadcast %30 : vector<8x1xi32> to vector<8x128xi32>
    %39 = arith.cmpi eq, %18, %38 : vector<8x128xi32>
    %cst_19 = arith.constant 0.000000e+00 : f32
    %40 = vector.broadcast %cst_19 : f32 to vector<8x128xf32>
    %41 = arith.select %39, %22, %40 : vector<8x128xi1>, vector<8x128xf32>
    %cst_20 = arith.constant dense<0.000000e+00> : vector<8xf32>
    %42 = vector.multi_reduction <add>, %41, %cst_20 [1] : vector<8x128xf32> to vector<8xf32>
    %43 = vector.shape_cast %42 : vector<8xf32> to vector<8x1xf32>
    %44 = arith.subf %43, %37 : vector<8x1xf32>
    %45 = vector.extract_strided_slice %17 {offsets = [0, 127], sizes = [8, 1], strides = [1, 1]} : vector<8x128xf32> to vector<8x1xf32>
    %c0_i32 = arith.constant 0 : i32
    %46 = vector.broadcast %c0_i32 : i32 to vector<8x128xi32>
    %47 = arith.cmpi eq, %18, %46 : vector<8x128xi32>
    %c1_i32 = arith.constant 1 : i32
    %48 = vector.broadcast %c1_i32 : i32 to vector<8x128xi32>
    %49 = arith.cmpi eq, %18, %48 : vector<8x128xi32>
    %c2_i32 = arith.constant 2 : i32
    %50 = vector.broadcast %c2_i32 : i32 to vector<8x128xi32>
    %51 = arith.cmpi eq, %18, %50 : vector<8x128xi32>
    %52 = arith.sitofp %30 : vector<8x1xi32> to vector<8x1xf32>
    %cst_21 = arith.constant 0.000000e+00 : f32
    %53 = vector.shape_cast %52 : vector<8x1xf32> to vector<8x1xf32>
    %54 = vector.broadcast %53 : vector<8x1xf32> to vector<8x128xf32>
    %55 = vector.broadcast %cst_21 : f32 to vector<8x128xf32>
    %56 = arith.select %51, %54, %55 : vector<8x128xi1>, vector<8x128xf32>
    %57 = vector.shape_cast %44 : vector<8x1xf32> to vector<8x1xf32>
    %58 = vector.broadcast %57 : vector<8x1xf32> to vector<8x128xf32>
    %59 = arith.select %49, %58, %56 : vector<8x128xi1>, vector<8x128xf32>
    %60 = vector.shape_cast %45 : vector<8x1xf32> to vector<8x1xf32>
    %61 = vector.broadcast %60 : vector<8x1xf32> to vector<8x128xf32>
    %62 = arith.select %47, %61, %59 : vector<8x128xi1>, vector<8x128xf32>
    %c0_22 = arith.constant 0 : index
    %c0_23 = arith.constant 0 : index
    %63 = vector.load %arg8[%c0_22, %c0_23] : memref<8x128xf32, #tpu.memory_space<vmem>>, vector<8x128xf32>
    tpu.vector_store %arg8[%c0_22, %c0_23], %62 {strides = array<i32>} : memref<8x128xf32, #tpu.memory_space<vmem>>, vector<8x128xf32>,
    return
  }
  func.func @transform_0(%arg0: i32) -> (i32, i32) {
    %c0_i32 = arith.constant 0 : i32
    %c0_i32_0 = arith.constant 0 : i32
    return %arg0, %c0_i32 : i32, i32
  }
  func.func @transform_1(%arg0: i32) -> (i32, i32) {
    %c0_i32 = arith.constant 0 : i32
    %c0_i32_0 = arith.constant 0 : i32
    %c0_i32_1 = arith.constant 0 : i32
    return %c0_i32, %c0_i32_0 : i32, i32
  }
  func.func @transform_2(%arg0: i32) -> (i32, i32) {
    %c0_i32 = arith.constant 0 : i32
    %c0_i32_0 = arith.constant 0 : i32
    %c0_i32_1 = arith.constant 0 : i32
    return %c0_i32, %c0_i32_0 : i32, i32
  }
  func.func @transform_3(%arg0: i32) -> (i32, i32) {
    %c0_i32 = arith.constant 0 : i32
    %c0_i32_0 = arith.constant 0 : i32
    %c0_i32_1 = arith.constant 0 : i32
    return %c0_i32, %c0_i32_0 : i32, i32
  }
  func.func @transform_4(%arg0: i32) -> (i32, i32) {
    %c0_i32 = arith.constant 0 : i32
    %c0_i32_0 = arith.constant 0 : i32
    %c0_i32_1 = arith.constant 0 : i32
    return %c0_i32, %c0_i32_0 : i32, i32
  }
  func.func @transform_5(%arg0: i32) -> (i32, i32) {
    %c0_i32 = arith.constant 0 : i32
    %c0_i32_0 = arith.constant 0 : i32
    %c0_i32_1 = arith.constant 0 : i32
    return %c0_i32, %c0_i32_0 : i32, i32
  }
  func.func @transform_6(%arg0: i32) -> (i32, i32) {
    %c0_i32 = arith.constant 0 : i32
    %c0_i32_0 = arith.constant 0 : i32
    %c0_i32_1 = arith.constant 0 : i32
    return %c0_i32, %c0_i32_0 : i32, i32
  }
  func.func @transform_7(%arg0: i32) -> (i32, i32) {
    %c0_i32 = arith.constant 0 : i32
    %c0_i32_0 = arith.constant 0 : i32
    return %arg0, %c0_i32 : i32, i32
  }
}

</mosaic_0001>

<bundles_post_ra>
// kernel: tpu_custom_call.1
= control target key start
LH: loop header
LB: loop body
LE: loop exit
PB: predicated region body
PF: predicated region fallthrough
CT: control target
= control target key end

     0   :  { %12 = vsyncpa [#allocation3], 0  ;;  %s874_s0 = inlined_call_operand.hbm [shape: f32[8,16], index: 0, kind: input, shape index: {}]   ;;  %s875_s1 = inlined_call_operand.hbm [shape: f32[16,128], index: 1, kind: input, shape index: {}]   ;;  %s876_s2 = inlined_call_operand.vmem [shape: f32[1,128], index: 2, kind: input, shape index: {}]   ;;  %s877_s3 = inlined_call_operand.hbm [shape: f32[128,128], index: 3, kind: input, shape index: {}]   ;;  %s878_s4 = inlined_call_operand.vmem [shape: f32[1,128], index: 4, kind: input, shape index: {}]   ;;  %s879_s5 = inlined_call_operand.hbm [shape: f32[128,128], index: 5, kind: input, shape index: {}]   ;;  %s880_s6 = inlined_call_operand.vmem [shape: f32[1,128], index: 6, kind: input, shape index: {}]   ;;  %s881_s7 = inlined_call_operand.hbm [shape: f32[8,128], index: 7, kind: output, shape index: {}]  }
   0x1   :  { %13 = vsyncpa [#allocation6], 0 }
   0x2   :  { %14 = vsyncpa [#allocation9], 0 }
   0x3   :  { %15 = vsyncpa [#allocation4], 0  ;;  %s725_s24 = smov [#allocation5]   ;;  %s607_s28 = scalar_lea.hbm %s875_s1, 256 }
   0x4   :  { %s31_s25 = sshll.u32 %s725_s24, 4  ;;  %p608_p0 = scmp.ne.s32.totalorder %s875_s1, %s607_s28  ;;  %s32_s25 = int_to_ptr.vmem [resolvable:$true] %s31_s25 }
   0x5   :  { %p611_p1 = scmp.lt.u32.totalorder %s607_s28, %s875_s1 }
   0x7   :  { %p613_p2 = pnand %p611_p1, %p608_p0 }
   0x9   :  { %616 = shalt.err (!%p613_p2)
}
   0xa   :  { %s617_s10 = scalar_lea.vmem %s32_s25, 256  ;;  %p622_p4 = scmp.lt.s32.totalorder %s32_s25, %s32_s25 }
   0xb   :  { %p618_p3 = scmp.ne.s32.totalorder %s32_s25, %s617_s10  ;;  %p623_p5 = scmp.lt.s32.totalorder %s617_s10, %s617_s10 }
   0xd   :  { %p624_p6 = por %p623_p5, %p622_p4 }
   0xf   :  { %p625_p7 = pnand %p624_p6, %p618_p3 }
  0x11   :  { %628 = shalt.err (!%p625_p7)
}
  0x12   :  { %s726_s11 = smov 128   ;;  %s727_s12 = smov 8  }
  0x13   :  { %37 = dma.hbm_to_vmem [thread:$0]  %s875_s1, 256, %s32_s25, [#allocation6], %s726_s11, %s726_s11, %s727_s12  }
  0x14   :  { %s728_s15 = smov [#allocation2]   ;;  %s729_s17 = smov [#allocation7]  }
  0x15   :  { %s22_s16 = sshll.u32 %s728_s15, 4  ;;  %s45_s18 = sshll.u32 %s729_s17, 4  ;;  %s23_s16 = int_to_ptr.vmem [resolvable:$true] %s22_s16  ;;  %s46_s18 = int_to_ptr.vmem [resolvable:$true] %s45_s18 }
  0x16   :  { %s629_s21 = scalar_lea.hbm %s874_s0, 128 }
  0x17   :  { %p630_p8 = scmp.ne.s32.totalorder %s874_s0, %s629_s21  ;;  %p633_p9 = scmp.lt.u32.totalorder %s629_s21, %s874_s0 }
  0x19   :  { %p635_p10 = pnand %p633_p9, %p630_p8 }
  0x1b   :  { %638 = shalt.err (!%p635_p10)
}
  0x1c   :  { %s639_s1 = scalar_lea.vmem %s23_s16, 128  ;;  %p644_p12 = scmp.lt.s32.totalorder %s23_s16, %s23_s16 }
  0x1d   :  { %p640_p11 = scmp.ne.s32.totalorder %s23_s16, %s639_s1  ;;  %p645_p13 = scmp.lt.s32.totalorder %s639_s1, %s639_s1 }
  0x1f   :  { %p646_p0 = por %p645_p13, %p644_p12 }
  0x21   :  { %p647_p1 = pnand %p646_p0, %p640_p11 }
  0x23   :  { %650 = shalt.err (!%p647_p1)
}
  0x24   :  { %25 = dma.hbm_to_vmem [thread:$0]  %s874_s0, 128, %s23_s16, [#allocation3]  }
  0x25   :  { %s651_s30 = scalar_lea.hbm %s877_s3, 2048 }
  0x26   :  { %p652_p2 = scmp.ne.s32.totalorder %s877_s3, %s651_s30  ;;  %p655_p3 = scmp.lt.u32.totalorder %s651_s30, %s877_s3 }
  0x28   :  { %p657_p4 = pnand %p655_p3, %p652_p2 }
  0x2a   :  { %660 = shalt.err (!%p657_p4)
}
  0x2b   :  { %s661_s14 = scalar_lea.vmem %s46_s18, 2048  ;;  %p666_p6 = scmp.lt.s32.totalorder %s46_s18, %s46_s18 }
  0x2c   :  { %p662_p5 = scmp.ne.s32.totalorder %s46_s18, %s661_s14  ;;  %p667_p7 = scmp.lt.s32.totalorder %s661_s14, %s661_s14 }
  0x2e   :  { %p668_p8 = por %p667_p7, %p666_p6 }
  0x30   :  { %p669_p9 = pnand %p668_p8, %p662_p5 }
  0x32   :  { %672 = shalt.err (!%p669_p9)
}
  0x33   :  { %51 = dma.hbm_to_vmem [thread:$0]  %s877_s3, 2048, %s46_s18, [#allocation6], %s726_s11, %s726_s11, %s727_s12  }
  0x34   :  { %s730_s16 = smov [#allocation8]   ;;  %s673_s21 = scalar_lea.hbm %s879_s5, 2048 }
  0x35   :  { %s59_s17 = sshll.u32 %s730_s16, 4  ;;  %p674_p10 = scmp.ne.s32.totalorder %s879_s5, %s673_s21  ;;  %s60_s17 = int_to_ptr.vmem [resolvable:$true] %s59_s17 }
  0x36   :  { %p677_p11 = scmp.lt.u32.totalorder %s673_s21, %s879_s5 }
  0x38   :  { %p679_p12 = pnand %p677_p11, %p674_p10 }
  0x3a   :  { %682 = shalt.err (!%p679_p12)
}
  0x3b   :  { %s683_s1 = scalar_lea.vmem %s60_s17, 2048  ;;  %p688_p0 = scmp.lt.s32.totalorder %s60_s17, %s60_s17 }
  0x3c   :  { %p684_p13 = scmp.ne.s32.totalorder %s60_s17, %s683_s1  ;;  %p689_p1 = scmp.lt.s32.totalorder %s683_s1, %s683_s1 }
  0x3e   :  { %p690_p2 = por %p689_p1, %p688_p0 }
  0x40   :  { %p691_p3 = pnand %p690_p2, %p684_p13 }
  0x42   :  { %694 = shalt.err (!%p691_p3)
}
  0x43   :  { %65 = dma.hbm_to_vmem [thread:$0]  %s879_s5, 2048, %s60_s17, [#allocation9], %s726_s11, %s726_s11, %s727_s12  }
  0x44   :  { %717 = dma.done.wait [#allocation3], 128  }
  0x45   :  { %718 = vsyncadd [#allocation3], 4294967168 }
  0x46   :  { %719 = dma.done.wait [#allocation6], 2304  }
  0x47   :  { %720 = vsyncadd [#allocation6], 4294964992 }
  0x48   :  { %721 = dma.done.wait [#allocation9], 2048  }
  0x49   :  { %722 = vsyncadd [#allocation9], 4294965248  ;;  %v731_v0 = vmov 0.0|0.0   ;;  %vm732_vm0 = vmmov 0   ;;  %v733_v1 = vmov 0.0   ;;  %v81_v2 = vld [vmem:[#allocation5] sm:$0xff] }
  0x4a   :  { %535 = vmatprep.subr.bf16.mxu0 %v731_v0  ;;  %462 = vmatprep.mubr.msk.f32.mxu0 %vm732_vm0, %v733_v1  ;;  %v82_v3 = vld [vmem:[#allocation5 + $0x8] sm:$0xff]  ;;  %v165_v5 = vld [vmem:[#allocation7] sm:$0xff]  ;;  %v166_v6 = vld [vmem:[#allocation7 + $0x8] sm:$0xff]  ;;  %vm90_vm1 = vcmask 130048  }
  0x4b   :  { %538 = vmatprep.subr.bf16.mxu1 %v731_v0  ;;  %497 = vmatprep.mubr.msk.f32.mxu1 %vm732_vm0, %v733_v1  ;;  %v536_v4 = vpack.c.bf16 %v82_v3, %v81_v2  ;;  %v167_v7 = vld [vmem:[#allocation7 + $0x10] sm:$0xff]  ;;  %v539_v8 = vpack.c.bf16 %v166_v6, %v165_v5  ;;  %v168_v9 = vld [vmem:[#allocation7 + $0x18] sm:$0xff]  ;;  %v80_v10 = vld [vmem:[#allocation2] sm:$0xff] }
  0x4c   :  { %v542_v11 = vpack.c.bf16 %v168_v9, %v167_v7  ;;  %v169_v12 = vld [vmem:[#allocation7 + $0x20] sm:$0xff]  ;;  %v170_v13 = vld [vmem:[#allocation7 + $0x28] sm:$0xff]  ;;  %v171_v15 = vld [vmem:[#allocation7 + $0x30] sm:$0xff] }
  0x4d   :  { %537 = vmatpush3.bf16.msra.mxu0 %v536_v4  ;;  %540 = vmatpush3.bf16.msra.mxu1 %v539_v8  ;;  %v545_v14 = vpack.c.bf16 %v170_v13, %v169_v12  ;;  %v172_v16 = vld [vmem:[#allocation7 + $0x38] sm:$0xff]  ;;  %v173_v18 = vld [vmem:[#allocation7 + $0x40] sm:$0xff]  ;;  %v174_v19 = vld [vmem:[#allocation7 + $0x48] sm:$0xff] }
  0x4e   :  { %562 = vmatprep.subr.bf16.mxu0 %v731_v0  ;;  %541 = vmatprep.subr.bf16.mxu1 %v731_v0  ;;  %v548_v17 = vpack.c.bf16 %v172_v16, %v171_v15  ;;  %v551_v20 = vpack.c.bf16 %v174_v19, %v173_v18  ;;  %v175_v21 = vld [vmem:[#allocation7 + $0x50] sm:$0xff]  ;;  %v176_v22 = vld [vmem:[#allocation7 + $0x58] sm:$0xff]  ;;  %v177_v24 = vld [vmem:[#allocation7 + $0x60] sm:$0xff] }
  0x4f   :  { %v554_v23 = vpack.c.bf16 %v176_v22, %v175_v21  ;;  %v178_v25 = vld [vmem:[#allocation7 + $0x68] sm:$0xff]  ;;  %v179_v27 = vld [vmem:[#allocation7 + $0x70] sm:$0xff]  ;;  %v180_v28 = vld [vmem:[#allocation7 + $0x78] sm:$0xff] }
  0x50   :  { %463 = vmatmul.mubr.msk.f32.vlgmr.msra.gmra.mrb[0].mxu0 %vm90_vm1, %v80_v10  ;;  %v557_v26 = vpack.c.bf16 %v178_v25, %v177_v24  ;;  %v560_v29 = vpack.c.bf16 %v180_v28, %v179_v27  ;;  %v259_v30 = vld [vmem:[#allocation8] sm:$0xff]  ;;  %v260_v31 = vld [vmem:[#allocation8 + $0x8] sm:$0xff]  ;;  %v261_v32 = vld [vmem:[#allocation8 + $0x10] sm:$0xff] }
  0x51   :  { %532 = vmatprep.mubr.msk.f32.mxu0 %vm732_vm0, %v733_v1  ;;  %543 = vmatpush3.bf16.msra.mxu1 %v542_v11  ;;  %v563_v33 = vpack.c.bf16 %v260_v31, %v259_v30  ;;  %v262_v34 = vld [vmem:[#allocation8 + $0x18] sm:$0xff]  ;;  %v263_v36 = vld [vmem:[#allocation8 + $0x20] sm:$0xff]  ;;  %v264_v37 = vld [vmem:[#allocation8 + $0x28] sm:$0xff]  ;;  %v352_v1 = vlaneseq  ;;  %v734_v11 = vmov 127  }
  0x52   :  { %544 = vmatprep.subr.bf16.mxu1 %v731_v0  ;;  %v566_v35 = vpack.c.bf16 %v262_v34, %v261_v32  ;;  %v569_v38 = vpack.c.bf16 %v264_v37, %v263_v36  ;;  %v265_v39 = vld [vmem:[#allocation8 + $0x30] sm:$0xff]  ;;  %v266_v40 = vld [vmem:[#allocation8 + $0x38] sm:$0xff]  ;;  %v267_v42 = vld [vmem:[#allocation8 + $0x40] sm:$0xff]  ;;  %597 = vset.pattern.permute.xlu1 %v734_v11 }
  0x53   :  { %564 = vmatpush3.bf16.msra.mxu0 %v563_v33  ;;  %v572_v41 = vpack.c.bf16 %v266_v40, %v265_v39  ;;  %v268_v43 = vld [vmem:[#allocation8 + $0x48] sm:$0xff]  ;;  %v269_v50 = vld [vmem:[#allocation8 + $0x50] sm:$0xff]  ;;  %v270_v51 = vld [vmem:[#allocation8 + $0x58] sm:$0xff]  ;;  %v353_v2 = vand.u32 127, %v352_v1  ;;  %598 = vset.pattern.permute.xlu0 %v734_v11 }
  0x54   :  { %565 = vmatprep.subr.bf16.mxu0 %v731_v0  ;;  %v575_v44 = vpack.c.bf16 %v268_v43, %v267_v42  ;;  %v417_v45 = vld [vmem:[%s876_s2] ss:$0 sm:$0xff]  ;;  %v578_v52 = vpack.c.bf16 %v270_v51, %v269_v50  ;;  %v271_v53 = vld [vmem:[#allocation8 + $0x60] sm:$0xff]  ;;  %v273_v56 = vld [vmem:[#allocation8 + $0x70] sm:$0xff] }
  0x55   :  { %546 = vmatpush3.bf16.msra.mxu1 %v545_v14  ;;  %v272_v54 = vld [vmem:[#allocation8 + $0x68] sm:$0xff]  ;;  %v274_v57 = vld [vmem:[#allocation8 + $0x78] sm:$0xff]  ;;  %vm354_vm2 = vcmp.lt.s32.totalorder %v353_v2, 4  ;;  %vm389_vm6 = vcmp.eq.s32.totalorder %v353_v2, 2  ;;  %vm388_vm7 = vcmp.eq.s32.totalorder %v353_v2, 1  ;;  %vm387_vm8 = vcmp.eq.s32.totalorder %v353_v2, 0 }
  0x56   :  { %547 = vmatprep.subr.bf16.mxu1 %v731_v0  ;;  %v581_v55 = vpack.c.bf16 %v272_v54, %v271_v53  ;;  %v584_v58 = vpack.c.bf16 %v274_v57, %v273_v56  ;;  %v419_v59 = vld [vmem:[%s878_s4] ss:$0 sm:$0xff]  ;;  %s735_s4 = smov [#allocation10]  }
  0x57   :  { %567 = vmatpush3.bf16.msra.mxu0 %v566_v35  ;;  %v420_v3 = vld [vmem:[%s880_s6] ss:$0 sm:$0xff]  ;;  %s406_s6 = sshll.u32 %s735_s4, 4  ;;  %s407_s6 = int_to_ptr.vmem [resolvable:$true] %s406_s6 }
  0x58   :  { %568 = vmatprep.subr.bf16.mxu0 %v731_v0  ;;  %s695_s28 = scalar_lea.vmem %s407_s6, 128  ;;  %p700_p5 = scmp.lt.s32.totalorder %s407_s6, %s407_s6 }
  0x59   :  { %549 = vmatpush3.bf16.msra.mxu1 %v548_v17  ;;  %p696_p4 = scmp.ne.s32.totalorder %s407_s6, %s695_s28  ;;  %p701_p6 = scmp.lt.s32.totalorder %s695_s28, %s695_s28 }
  0x5a   :  { %550 = vmatprep.subr.bf16.mxu1 %v731_v0 }
  0x5b   :  { %570 = vmatpush3.bf16.msra.mxu0 %v569_v38  ;;  %p702_p7 = por %p701_p6, %p700_p5 }
  0x5c   :  { %571 = vmatprep.subr.bf16.mxu0 %v731_v0 }
  0x5d   :  { %552 = vmatpush3.bf16.msra.mxu1 %v551_v20  ;;  %p703_p8 = pnand %p702_p7, %p696_p4 }
  0x5e   :  { %553 = vmatprep.subr.bf16.mxu1 %v731_v0 }
  0x5f   :  { %573 = vmatpush3.bf16.msra.mxu0 %v572_v41 }
  0x60   :  { %574 = vmatprep.subr.bf16.mxu0 %v731_v0 }
  0x61   :  { %555 = vmatpush3.bf16.msra.mxu1 %v554_v23 }
  0x62   :  { %556 = vmatprep.subr.bf16.mxu1 %v731_v0 }
  0x63   :  { %576 = vmatpush3.bf16.msra.mxu0 %v575_v44 }
  0x64   :  { %577 = vmatprep.subr.bf16.mxu0 %v731_v0 }
  0x65   :  { %558 = vmatpush3.bf16.msra.mxu1 %v557_v26 }
  0x66   :  { %559 = vmatprep.subr.bf16.mxu1 %v731_v0 }
  0x67   :  { %579 = vmatpush3.bf16.msra.mxu0 %v578_v52 }
  0x68   :  { %580 = vmatprep.subr.bf16.mxu0 %v731_v0 }
  0x69   :  { %561 = vmatpush3.bf16.msra.mxu1 %v560_v29 }
  0x6b   :  { %582 = vmatpush3.bf16.msra.mxu0 %v581_v55 }
  0x6c   :  { %583 = vmatprep.subr.bf16.mxu0 %v731_v0 }
  0x6f   :  { %585 = vmatpush3.bf16.msra.mxu0 %v584_v58 }
 0x123   :  { %v160_v46 = vpop.f32.mrb[0].mxu0 }
 0x124   :  { %v161_v47 = vadd.f32 %v417_v45, %v160_v46  ;;  %v464_v48 = vpop.f32.mrb[1].mxu0 }
 0x126   :  { %599 = vtanh.f32 %v161_v47 }
 0x130   :  { %v600_v49 = vpop.eup %599 }
 0x131   :  { %498 = vmatmul.mubr.f32.vlgmr.msra.gmra.mrb[0].mxu1 %v600_v49 }
 0x204   :  { %v254_v60 = vpop.f32.mrb[0].mxu1 }
 0x205   :  { %v255_v61 = vadd.f32 %v419_v59, %v254_v60  ;;  %v499_v62 = vpop.f32.mrb[1].mxu1 }
 0x207   :  { %601 = vtanh.f32 %v255_v61 }
 0x211   :  { %v602_v63 = vpop.eup %601 }
 0x212   :  { %533 = vmatmul.mubr.f32.vlgmr.msra.gmra.mrb[2].mxu0 %v602_v63 }
 0x2e5   :  { %v348_v4 = vpop.f32.mrb[2].mxu0 }
 0x2e6   :  { %v349_v0 = vadd.f32 %v420_v3, %v348_v4  ;;  %v534_v5 = vpop.f32.mrb[3].mxu0 }
 0x2e8   :  { %v355_v6 = vsel %vm354_vm2, %v349_v0, -1e+30 }
 0x2e9   :  { %356 = vmax.xlane.f32.xlu0 %v355_v6 }
 0x376   :  { %v357_v7 = vpop.xlane.xlu0 %356 }
 0x377   :  { %vm358_vm3 = vcmp.eq.f32.partialorder %v355_v6, %v357_v7  ;;  %v374_v12 = vsub.f32 %v355_v6, %v357_v7 }
 0x378   :  { %v359_v8 = vsel %vm358_vm3, %v353_v2, 128 }
 0x379   :  { %v361_v9 = vshra.s32 %v359_v8, 16  ;;  %v375_v13 = vmul.f32 1.442695, %v374_v12  ;;  %v360_v14 = vand.u32 65535, %v359_v8 }
 0x37b   :  { %v363_v10 = vcvt.s32.f32 %v361_v9  ;;  %603 = vpow2.f32 %v375_v13  ;;  %v362_v16 = vcvt.s32.f32 %v360_v14 }
 0x37d   :  { %364 = vmin.xlane.f32.xlu0 %v363_v10 }
 0x385   :  { %v604_v18 = vpop.eup %603 }
 0x40a   :  { %v365_v15 = vpop.xlane.xlu0 %364 }
 0x40b   :  { %vm366_vm4 = vcmp.eq.f32.partialorder %v363_v10, %v365_v15  ;;  %v371_v19 = vcvt.f32.s32 %v365_v15 }
 0x40c   :  { %v367_v17 = vsel %vm366_vm4, %v362_v16, inf }
 0x40d   :  { %368 = vmin.xlane.f32.xlu1 %v367_v17  ;;  %v372_v21 = vshll.u32 %v371_v19, 16 }
 0x411   :  { %377 = vadd.xlane.f32.xlu1 %v604_v18 }
 0x422   :  { %395 = vperm.xlu1 %597, %v349_v0  }
 0x49a   :  { %v369_v20 = vpop.xlane.xlu1 %368 }
 0x49b   :  { %v370_v22 = vcvt.f32.s32 %v369_v20 }
 0x49d   :  { %v373_v23 = vadd.s32 %v372_v21, %v370_v22 }
 0x49e   :  { %v378_v25 = vpop.xlane.xlu1 %377 }
 0x49f   :  { %vm382_vm5 = vcmp.eq.s32.totalorder %v353_v2, %v373_v23  ;;  %605 = vlog2.f32 %v378_v25  ;;  %v390_v28 = vcvt.s32.f32 %v373_v23 }
 0x4a0   :  { %v383_v24 = vsel %vm382_vm5, %v355_v6, 0.0 }
 0x4a1   :  { %384 = vadd.xlane.f32.xlu0 %v383_v24  ;;  %v391_v32 = vsel %vm389_vm6, %v390_v28, 0.0 }
 0x4a2   :  { %v396_v33 = vpop.permute.xlu1 %395 }
 0x4a9   :  { %v606_v26 = vpop.eup %605 }
 0x4aa   :  { %v380_v27 = vmul.f32 0.6931472, %v606_v26 }
 0x4ac   :  { %v381_v29 = vadd.f32 %v380_v27, %v357_v7 }
 0x52e   :  { %v385_v30 = vpop.xlane.xlu0 %384 }
 0x52f   :  { %v386_v31 = vsub.f32 %v385_v30, %v381_v29 }
 0x531   :  { %v392_v34 = vsel %vm388_vm7, %v386_v31, %v391_v32 }
 0x532   :  { %v398_v35 = vsel %vm387_vm8, %v396_v33, %v392_v34 }
 0x533   :  { %399 = vst [vmem:[#allocation10] sm:$0xff] %v398_v35 }
 0x534   :  { %706 = shalt.err (!%p703_p8)
}
 0x535   :  { %s707_s8 = scalar_lea.hbm %s881_s7, 128 }
 0x536   :  { %p708_p9 = scmp.ne.s32.totalorder %s881_s7, %s707_s8  ;;  %p711_p10 = scmp.lt.u32.totalorder %s707_s8, %s881_s7 }
 0x538   :  { %p713_p11 = pnand %p711_p10, %p708_p9 }
 0x53a   :  { %716 = shalt.err (!%p713_p11)
}
 0x53b   :  { %409 = dma.vmem_to_hbm [thread:$0]  %s407_s6, 128, %s881_s7, [#allocation4]  }
 0x53c   :  { %723 = dma.done.wait [#allocation4], 128  }
 0x53d   :  { %724 = vsyncadd [#allocation4], 4294967168 }
 0x53e   :  { %413 = vsyncpa [#allocation3], 1 }
 0x53f   :  { %414 = vsyncpa [#allocation6], 1 }
 0x540   :  { %415 = vsyncpa [#allocation9], 1 }
 0x541   :  { %416 = vsyncpa [#allocation4], 1 }

</bundles_post_ra>
